<compile_context>
chip_gen: v7x
topology: tpu7x:2x2x1
jax: 0.10.0
libtpu: 0.0.40
codegen_flags: <defaults>
</compile_context>

<pallas_src>
import functools

import jax
import jax.numpy as jnp
from jax.experimental import pallas as pl
from jax.experimental.pallas import tpu as pltpu


def lstm_head_kernel(
    x_ref,             # [T*B, E]   bf16  time-major flattened embedded sentence
    wih_ref,           # [E, 4H]    bf16  LSTM input->gates weights (transposed)
    whh_ref,           # [H, 4H]    bf16  LSTM hidden->gates weights (transposed)
    b_lstm_ref,        # [1, 4H]    f32   combined LSTM bias (b_ih + b_hh)
    extras_ref,        # [B, 16+ED] bf16  cat(user_embeds, extra_inpts)
    w_extraw_ref,      # [16+ED, H] bf16
    w_hid_ref,         # [H, H]     bf16
    head_rows_ref,     # [4, H]     f32   rows: b_extraw, b_hid, w_extra2gate, w_hidden2scalar
    head_scalars_ref,  # [1, 2]     f32   [b_extra2gate, b_hidden2scalar]
    out_ref,           # [B, 1]     f32
    *,
    seq_len: int,
    batch: int,
):
    T, B = seq_len, batch
    H = whh_ref.shape[0]

    whh = whh_ref[...]                                   # hoisted weight load

    # ---- hoisted input projection: single large MXU call + one bias add ----
    gates_x = (
        jnp.dot(x_ref[...], wih_ref[...], preferred_element_type=jnp.float32)
        + b_lstm_ref[...]
    )                                                    # [T*B, 4H] f32

    # ---- LSTM recurrence: fully unrolled, h/c loop-carried (no VMEM state) ----
    h = jnp.zeros((B, H), jnp.float32)
    c = jnp.zeros((B, H), jnp.float32)
    for t in range(T):                                   # T is static -> full unroll
        gates = gates_x[t * B:(t + 1) * B, :] + jnp.dot(
            h.astype(jnp.bfloat16), whh, preferred_element_type=jnp.float32
        )                                                # [B, 4H] f32
        # Full-lane-width EUP passes, then slice. PyTorch gate order: i, f, g, o.
        sg = jax.nn.sigmoid(gates)
        tg = jnp.tanh(gates)
        i_g = sg[:, 0 * H:1 * H]
        f_g = sg[:, 1 * H:2 * H]
        g_g = tg[:, 2 * H:3 * H]
        o_g = sg[:, 3 * H:4 * H]
        c = f_g * c + i_g * g_g
        h = o_g * jnp.tanh(c)

    h_last = h                                           # == lstm_out[:, -1, :]

    hr = head_rows_ref[...]
    b_extraw  = hr[0:1, :]                               # [1, H]
    b_hid     = hr[1:2, :]                               # [1, H]
    w_e2g_row = hr[2:3, :]                               # [1, H]
    w_h2s_row = hr[3:4, :]                               # [1, H]
    b_e2g = head_scalars_ref[:, 0:1]                     # [1, 1]
    b_h2s = head_scalars_ref[:, 1:2]                     # [1, 1]

    # scalar branch: relu(hiddenw(h_last)) -> hidden2scalar (VPU row-reduce)
    hid = jnp.maximum(
        jnp.dot(h_last.astype(jnp.bfloat16), w_hid_ref[...],
                preferred_element_type=jnp.float32) + b_hid,
        0.0,
    )                                                    # [B, H]
    scalar_out = jnp.sum(hid * w_h2s_row, axis=-1, keepdims=True) + b_h2s   # [B, 1]

    # gate branch: relu(extraw(extras)) -> tanh(extra2gate(.)) (VPU row-reduce)
    ex = jnp.maximum(
        jnp.dot(extras_ref[...], w_extraw_ref[...],
                preferred_element_type=jnp.float32) + b_extraw,
        0.0,
    )                                                    # [B, H]
    gate = jnp.tanh(jnp.sum(ex * w_e2g_row, axis=-1, keepdims=True) + b_e2g)  # [B, 1]

    out_ref[...] = (scalar_out * gate).astype(out_ref.dtype)


def lstm_model_old_forward(sentence, user_idx, extra_inpts, params):
    """Mirrors LSTMModelOld.forward.

    sentence:    int32 [B, T]
    user_idx:    int32 [B]
    extra_inpts: float32 [B, extra_input_dim]
    returns:     float32 [B, 1]
    """
    B, T = sentence.shape
    H = params["lstm_w_hh"].shape[1]
    E = params["word_emb"].shape[1]
    bf16 = jnp.bfloat16

    # --- plain-JAX glue: gathers (directly time-major), concat, weight prep ---
    x_tm = params["word_emb"][sentence.T]                # [T, B, E], no transpose pass
    x_flat = x_tm.reshape(T * B, E).astype(bf16)         # flattened for hoisted matmul

    user_embeds = params["user_emb"][user_idx]           # [B, 16]
    extras = jnp.concatenate([user_embeds, extra_inpts], axis=-1).astype(bf16)

    wih_t = params["lstm_w_ih"].T.astype(bf16)           # [E, 4H]
    whh_t = params["lstm_w_hh"].T.astype(bf16)           # [H, 4H]
    b_lstm = (params["lstm_b_ih"] + params["lstm_b_hh"])[None, :].astype(jnp.float32)

    w_extraw = params["extraw_w"].T.astype(bf16)         # [16+ED, H]
    w_hid = params["hiddenw_w"].T.astype(bf16)           # [H, H]

    # pack the small params: 4 H-wide rows + 2 scalars
    head_rows = jnp.stack(
        [params["extraw_b"], params["hiddenw_b"],
         params["extra2gate_w"][0], params["hidden2scalar_w"][0]],
        axis=0).astype(jnp.float32)                      # [4, H]
    head_scalars = jnp.concatenate(
        [params["extra2gate_b"], params["hidden2scalar_b"]]
    )[None, :].astype(jnp.float32)                       # [1, 2]

    inputs = (x_flat, wih_t, whh_t, b_lstm, extras, w_extraw, w_hid,
              head_rows, head_scalars)

    vmem = pl.BlockSpec(memory_space=pltpu.MemorySpace.VMEM)
    kernel = functools.partial(lstm_head_kernel, seq_len=T, batch=B)

    # TODO(synk): for production batch sizes, add a grid over B (marked
    # "parallel") with BlockSpec streaming of x / extras / out, and re-derive
    # the VMEM budget (raise vmem_limit_bytes) for v7x's 64 MiB per core.
    out = pl.pallas_call(
        kernel,
        out_shape=jax.ShapeDtypeStruct((B, 1), jnp.float32),
        in_specs=[vmem] * len(inputs),
        out_specs=vmem,
    )(*inputs)
    return out


def init_params(key, embedding_dim, extra_input_dim, hidden_dim,
                vocab_size, user_size):
    ks = jax.random.split(key, 14)
    H, E, ED = hidden_dim, embedding_dim, extra_input_dim
    scale = 0.1
    f32 = jnp.float32
    return {
        "word_emb":        scale * jax.random.normal(ks[0], (vocab_size, E), f32),
        "user_emb":        scale * jax.random.normal(ks[1], (user_size, 16), f32),
        # nn.LSTM parameters (gate order i, f, g, o), PyTorch shapes [4H, in]
        "lstm_w_ih":       scale * jax.random.normal(ks[2], (4 * H, E), f32),
        "lstm_w_hh":       scale * jax.random.normal(ks[3], (4 * H, H), f32),
        "lstm_b_ih":       scale * jax.random.normal(ks[4], (4 * H,), f32),
        "lstm_b_hh":       scale * jax.random.normal(ks[5], (4 * H,), f32),
        # nn.Linear parameters, PyTorch shapes [out, in]
        "extraw_w":        scale * jax.random.normal(ks[6], (H, 16 + ED), f32),
        "extraw_b":        scale * jax.random.normal(ks[7], (H,), f32),
        "extra2gate_w":    scale * jax.random.normal(ks[8], (1, H), f32),
        "extra2gate_b":    scale * jax.random.normal(ks[9], (1,), f32),
        "hiddenw_w":       scale * jax.random.normal(ks[10], (H, H), f32),
        "hiddenw_b":       scale * jax.random.normal(ks[11], (H,), f32),
        "hidden2scalar_w": scale * jax.random.normal(ks[12], (1, H), f32),
        "hidden2scalar_b": scale * jax.random.normal(ks[13], (1,), f32),
    }


if __name__ == "__main__":
    # Small, forward-consistent shapes.
    B, T = 2, 8
    embedding_dim = 32
    extra_input_dim = 4
    hidden_dim = 32
    vocab_size = 50
    user_size = 10

    key = jax.random.PRNGKey(0)
    k_params, k_sent, k_user, k_extra = jax.random.split(key, 4)

    params = init_params(k_params, embedding_dim, extra_input_dim,
                         hidden_dim, vocab_size, user_size)

    sentence = jax.random.randint(k_sent, (B, T), 0, vocab_size, dtype=jnp.int32)
    user_idx = jax.random.randint(k_user, (B,), 0, user_size, dtype=jnp.int32)
    extra_inpts = jax.random.normal(k_extra, (B, extra_input_dim), jnp.float32)

    out = lstm_model_old_forward(sentence, user_idx, extra_inpts, params)
    out = jax.block_until_ready(out)
    assert out.shape == (B, 1) and out.dtype == jnp.float32
    print("KERNEL_OK")
</pallas_src>

<mosaic_0001>
module attributes {stable_mosaic.version = 11 : i64} {
  func.func @lstm_head_kernel(%arg0: memref<16x32xbf16, #tpu.memory_space<vmem>>, %arg1: memref<32x128xbf16, #tpu.memory_space<vmem>>, %arg2: memref<32x128xbf16, #tpu.memory_space<vmem>>, %arg3: memref<1x128xf32, #tpu.memory_space<vmem>>, %arg4: memref<2x20xbf16, #tpu.memory_space<vmem>>, %arg5: memref<20x32xbf16, #tpu.memory_space<vmem>>, %arg6: memref<32x32xbf16, #tpu.memory_space<vmem>>, %arg7: memref<4x32xf32, #tpu.memory_space<vmem>>, %arg8: memref<1x2xf32, #tpu.memory_space<vmem>>, %arg9: memref<2x1xf32, #tpu.memory_space<vmem>>) attributes {dimension_semantics = [], scalar_prefetch = 0 : i64, scratch_operands = 0 : i64, tpu.core_type = #tpu.core_type<tc>} {
    %c0 = arith.constant 0 : index
    %c0_0 = arith.constant 0 : index
    %0 = vector.load %arg2[%c0, %c0_0] : memref<32x128xbf16, #tpu.memory_space<vmem>>, vector<32x128xbf16>
    %c0_1 = arith.constant 0 : index
    %c0_2 = arith.constant 0 : index
    %1 = vector.load %arg0[%c0_1, %c0_2] : memref<16x32xbf16, #tpu.memory_space<vmem>>, vector<16x32xbf16>
    %c0_3 = arith.constant 0 : index
    %c0_4 = arith.constant 0 : index
    %2 = vector.load %arg1[%c0_3, %c0_4] : memref<32x128xbf16, #tpu.memory_space<vmem>>, vector<32x128xbf16>
    %cst = arith.constant dense<0.000000e+00> : vector<16x128xf32>
    %3 = tpu.matmul %1, %2, %cst {dimension_numbers = #tpu.dot_dimension_numbers<[1], [0], [0], [1], [0, 0, 1, 1], [], []>} : vector<16x32xbf16>, vector<32x128xbf16>, vector<16x128xf32> -> vector<16x128xf32>
    %c0_5 = arith.constant 0 : index
    %c0_6 = arith.constant 0 : index
    %4 = vector.load %arg3[%c0_5, %c0_6] : memref<1x128xf32, #tpu.memory_space<vmem>>, vector<1x128xf32>
    %5 = vector.broadcast %4 : vector<1x128xf32> to vector<16x128xf32>
    %6 = arith.addf %3, %5 : vector<16x128xf32>
    %cst_7 = arith.constant 0.000000e+00 : f32
    %7 = vector.broadcast %cst_7 : f32 to vector<2x32xf32>
    %cst_8 = arith.constant 0.000000e+00 : f32
    %8 = vector.broadcast %cst_8 : f32 to vector<2x32xf32>
    %9 = vector.extract_strided_slice %6 {offsets = [0, 0], sizes = [2, 128], strides = [1, 1]} : vector<16x128xf32> to vector<2x128xf32>
    %10 = arith.truncf %7 : vector<2x32xf32> to vector<2x32xbf16>
    %cst_9 = arith.constant dense<0.000000e+00> : vector<2x128xf32>
    %11 = tpu.matmul %10, %0, %cst_9 {dimension_numbers = #tpu.dot_dimension_numbers<[1], [0], [0], [1], [0, 0, 1, 1], [], []>} : vector<2x32xbf16>, vector<32x128xbf16>, vector<2x128xf32> -> vector<2x128xf32>
    %12 = arith.addf %9, %11 : vector<2x128xf32>
    %13 = arith.negf %12 : vector<2x128xf32>
    %14 = math.exp %13 : vector<2x128xf32>
    %cst_10 = arith.constant 1.000000e+00 : f32
    %15 = vector.broadcast %cst_10 : f32 to vector<2x128xf32>
    %16 = arith.addf %15, %14 : vector<2x128xf32>
    %17 = arith.divf %15, %16 : vector<2x128xf32>
    %18 = math.tanh %12 : vector<2x128xf32>
    %19 = vector.extract_strided_slice %17 {offsets = [0, 0], sizes = [2, 32], strides = [1, 1]} : vector<2x128xf32> to vector<2x32xf32>
    %20 = vector.extract_strided_slice %17 {offsets = [0, 32], sizes = [2, 32], strides = [1, 1]} : vector<2x128xf32> to vector<2x32xf32>
    %21 = vector.extract_strided_slice %18 {offsets = [0, 64], sizes = [2, 32], strides = [1, 1]} : vector<2x128xf32> to vector<2x32xf32>
    %22 = vector.extract_strided_slice %17 {offsets = [0, 96], sizes = [2, 32], strides = [1, 1]} : vector<2x128xf32> to vector<2x32xf32>
    %23 = arith.mulf %20, %8 : vector<2x32xf32>
    %24 = arith.mulf %19, %21 : vector<2x32xf32>
    %25 = arith.addf %23, %24 : vector<2x32xf32>
    %26 = math.tanh %25 : vector<2x32xf32>
    %27 = arith.mulf %22, %26 : vector<2x32xf32>
    %28 = vector.extract_strided_slice %6 {offsets = [2, 0], sizes = [2, 128], strides = [1, 1]} : vector<16x128xf32> to vector<2x128xf32>
    %29 = arith.truncf %27 : vector<2x32xf32> to vector<2x32xbf16>
    %cst_11 = arith.constant dense<0.000000e+00> : vector<2x128xf32>
    %30 = tpu.matmul %29, %0, %cst_11 {dimension_numbers = #tpu.dot_dimension_numbers<[1], [0], [0], [1], [0, 0, 1, 1], [], []>} : vector<2x32xbf16>, vector<32x128xbf16>, vector<2x128xf32> -> vector<2x128xf32>
    %31 = arith.addf %28, %30 : vector<2x128xf32>
    %32 = arith.negf %31 : vector<2x128xf32>
    %33 = math.exp %32 : vector<2x128xf32>
    %cst_12 = arith.constant 1.000000e+00 : f32
    %34 = vector.broadcast %cst_12 : f32 to vector<2x128xf32>
    %35 = arith.addf %34, %33 : vector<2x128xf32>
    %36 = arith.divf %34, %35 : vector<2x128xf32>
    %37 = math.tanh %31 : vector<2x128xf32>
    %38 = vector.extract_strided_slice %36 {offsets = [0, 0], sizes = [2, 32], strides = [1, 1]} : vector<2x128xf32> to vector<2x32xf32>
    %39 = vector.extract_strided_slice %36 {offsets = [0, 32], sizes = [2, 32], strides = [1, 1]} : vector<2x128xf32> to vector<2x32xf32>
    %40 = vector.extract_strided_slice %37 {offsets = [0, 64], sizes = [2, 32], strides = [1, 1]} : vector<2x128xf32> to vector<2x32xf32>
    %41 = vector.extract_strided_slice %36 {offsets = [0, 96], sizes = [2, 32], strides = [1, 1]} : vector<2x128xf32> to vector<2x32xf32>
    %42 = arith.mulf %39, %25 : vector<2x32xf32>
    %43 = arith.mulf %38, %40 : vector<2x32xf32>
    %44 = arith.addf %42, %43 : vector<2x32xf32>
    %45 = math.tanh %44 : vector<2x32xf32>
    %46 = arith.mulf %41, %45 : vector<2x32xf32>
    %47 = vector.extract_strided_slice %6 {offsets = [4, 0], sizes = [2, 128], strides = [1, 1]} : vector<16x128xf32> to vector<2x128xf32>
    %48 = arith.truncf %46 : vector<2x32xf32> to vector<2x32xbf16>
    %cst_13 = arith.constant dense<0.000000e+00> : vector<2x128xf32>
    %49 = tpu.matmul %48, %0, %cst_13 {dimension_numbers = #tpu.dot_dimension_numbers<[1], [0], [0], [1], [0, 0, 1, 1], [], []>} : vector<2x32xbf16>, vector<32x128xbf16>, vector<2x128xf32> -> vector<2x128xf32>
    %50 = arith.addf %47, %49 : vector<2x128xf32>
    %51 = arith.negf %50 : vector<2x128xf32>
    %52 = math.exp %51 : vector<2x128xf32>
    %cst_14 = arith.constant 1.000000e+00 : f32
    %53 = vector.broadcast %cst_14 : f32 to vector<2x128xf32>
    %54 = arith.addf %53, %52 : vector<2x128xf32>
    %55 = arith.divf %53, %54 : vector<2x128xf32>
    %56 = math.tanh %50 : vector<2x128xf32>
    %57 = vector.extract_strided_slice %55 {offsets = [0, 0], sizes = [2, 32], strides = [1, 1]} : vector<2x128xf32> to vector<2x32xf32>
    %58 = vector.extract_strided_slice %55 {offsets = [0, 32], sizes = [2, 32], strides = [1, 1]} : vector<2x128xf32> to vector<2x32xf32>
    %59 = vector.extract_strided_slice %56 {offsets = [0, 64], sizes = [2, 32], strides = [1, 1]} : vector<2x128xf32> to vector<2x32xf32>
    %60 = vector.extract_strided_slice %55 {offsets = [0, 96], sizes = [2, 32], strides = [1, 1]} : vector<2x128xf32> to vector<2x32xf32>
    %61 = arith.mulf %58, %44 : vector<2x32xf32>
    %62 = arith.mulf %57, %59 : vector<2x32xf32>
    %63 = arith.addf %61, %62 : vector<2x32xf32>
    %64 = math.tanh %63 : vector<2x32xf32>
    %65 = arith.mulf %60, %64 : vector<2x32xf32>
    %66 = vector.extract_strided_slice %6 {offsets = [6, 0], sizes = [2, 128], strides = [1, 1]} : vector<16x128xf32> to vector<2x128xf32>
    %67 = arith.truncf %65 : vector<2x32xf32> to vector<2x32xbf16>
    %cst_15 = arith.constant dense<0.000000e+00> : vector<2x128xf32>
    %68 = tpu.matmul %67, %0, %cst_15 {dimension_numbers = #tpu.dot_dimension_numbers<[1], [0], [0], [1], [0, 0, 1, 1], [], []>} : vector<2x32xbf16>, vector<32x128xbf16>, vector<2x128xf32> -> vector<2x128xf32>
    %69 = arith.addf %66, %68 : vector<2x128xf32>
    %70 = arith.negf %69 : vector<2x128xf32>
    %71 = math.exp %70 : vector<2x128xf32>
    %cst_16 = arith.constant 1.000000e+00 : f32
    %72 = vector.broadcast %cst_16 : f32 to vector<2x128xf32>
    %73 = arith.addf %72, %71 : vector<2x128xf32>
    %74 = arith.divf %72, %73 : vector<2x128xf32>
    %75 = math.tanh %69 : vector<2x128xf32>
    %76 = vector.extract_strided_slice %74 {offsets = [0, 0], sizes = [2, 32], strides = [1, 1]} : vector<2x128xf32> to vector<2x32xf32>
    %77 = vector.extract_strided_slice %74 {offsets = [0, 32], sizes = [2, 32], strides = [1, 1]} : vector<2x128xf32> to vector<2x32xf32>
    %78 = vector.extract_strided_slice %75 {offsets = [0, 64], sizes = [2, 32], strides = [1, 1]} : vector<2x128xf32> to vector<2x32xf32>
    %79 = vector.extract_strided_slice %74 {offsets = [0, 96], sizes = [2, 32], strides = [1, 1]} : vector<2x128xf32> to vector<2x32xf32>
    %80 = arith.mulf %77, %63 : vector<2x32xf32>
    %81 = arith.mulf %76, %78 : vector<2x32xf32>
    %82 = arith.addf %80, %81 : vector<2x32xf32>
    %83 = math.tanh %82 : vector<2x32xf32>
    %84 = arith.mulf %79, %83 : vector<2x32xf32>
    %85 = vector.extract_strided_slice %6 {offsets = [8, 0], sizes = [2, 128], strides = [1, 1]} : vector<16x128xf32> to vector<2x128xf32>
    %86 = arith.truncf %84 : vector<2x32xf32> to vector<2x32xbf16>
    %cst_17 = arith.constant dense<0.000000e+00> : vector<2x128xf32>
    %87 = tpu.matmul %86, %0, %cst_17 {dimension_numbers = #tpu.dot_dimension_numbers<[1], [0], [0], [1], [0, 0, 1, 1], [], []>} : vector<2x32xbf16>, vector<32x128xbf16>, vector<2x128xf32> -> vector<2x128xf32>
    %88 = arith.addf %85, %87 : vector<2x128xf32>
    %89 = arith.negf %88 : vector<2x128xf32>
    %90 = math.exp %89 : vector<2x128xf32>
    %cst_18 = arith.constant 1.000000e+00 : f32
    %91 = vector.broadcast %cst_18 : f32 to vector<2x128xf32>
    %92 = arith.addf %91, %90 : vector<2x128xf32>
    %93 = arith.divf %91, %92 : vector<2x128xf32>
    %94 = math.tanh %88 : vector<2x128xf32>
    %95 = vector.extract_strided_slice %93 {offsets = [0, 0], sizes = [2, 32], strides = [1, 1]} : vector<2x128xf32> to vector<2x32xf32>
    %96 = vector.extract_strided_slice %93 {offsets = [0, 32], sizes = [2, 32], strides = [1, 1]} : vector<2x128xf32> to vector<2x32xf32>
    %97 = vector.extract_strided_slice %94 {offsets = [0, 64], sizes = [2, 32], strides = [1, 1]} : vector<2x128xf32> to vector<2x32xf32>
    %98 = vector.extract_strided_slice %93 {offsets = [0, 96], sizes = [2, 32], strides = [1, 1]} : vector<2x128xf32> to vector<2x32xf32>
    %99 = arith.mulf %96, %82 : vector<2x32xf32>
    %100 = arith.mulf %95, %97 : vector<2x32xf32>
    %101 = arith.addf %99, %100 : vector<2x32xf32>
    %102 = math.tanh %101 : vector<2x32xf32>
    %103 = arith.mulf %98, %102 : vector<2x32xf32>
    %104 = vector.extract_strided_slice %6 {offsets = [10, 0], sizes = [2, 128], strides = [1, 1]} : vector<16x128xf32> to vector<2x128xf32>
    %105 = arith.truncf %103 : vector<2x32xf32> to vector<2x32xbf16>
    %cst_19 = arith.constant dense<0.000000e+00> : vector<2x128xf32>
    %106 = tpu.matmul %105, %0, %cst_19 {dimension_numbers = #tpu.dot_dimension_numbers<[1], [0], [0], [1], [0, 0, 1, 1], [], []>} : vector<2x32xbf16>, vector<32x128xbf16>, vector<2x128xf32> -> vector<2x128xf32>
    %107 = arith.addf %104, %106 : vector<2x128xf32>
    %108 = arith.negf %107 : vector<2x128xf32>
    %109 = math.exp %108 : vector<2x128xf32>
    %cst_20 = arith.constant 1.000000e+00 : f32
    %110 = vector.broadcast %cst_20 : f32 to vector<2x128xf32>
    %111 = arith.addf %110, %109 : vector<2x128xf32>
    %112 = arith.divf %110, %111 : vector<2x128xf32>
    %113 = math.tanh %107 : vector<2x128xf32>
    %114 = vector.extract_strided_slice %112 {offsets = [0, 0], sizes = [2, 32], strides = [1, 1]} : vector<2x128xf32> to vector<2x32xf32>
    %115 = vector.extract_strided_slice %112 {offsets = [0, 32], sizes = [2, 32], strides = [1, 1]} : vector<2x128xf32> to vector<2x32xf32>
    %116 = vector.extract_strided_slice %113 {offsets = [0, 64], sizes = [2, 32], strides = [1, 1]} : vector<2x128xf32> to vector<2x32xf32>
    %117 = vector.extract_strided_slice %112 {offsets = [0, 96], sizes = [2, 32], strides = [1, 1]} : vector<2x128xf32> to vector<2x32xf32>
    %118 = arith.mulf %115, %101 : vector<2x32xf32>
    %119 = arith.mulf %114, %116 : vector<2x32xf32>
    %120 = arith.addf %118, %119 : vector<2x32xf32>
    %121 = math.tanh %120 : vector<2x32xf32>
    %122 = arith.mulf %117, %121 : vector<2x32xf32>
    %123 = vector.extract_strided_slice %6 {offsets = [12, 0], sizes = [2, 128], strides = [1, 1]} : vector<16x128xf32> to vector<2x128xf32>
    %124 = arith.truncf %122 : vector<2x32xf32> to vector<2x32xbf16>
    %cst_21 = arith.constant dense<0.000000e+00> : vector<2x128xf32>
    %125 = tpu.matmul %124, %0, %cst_21 {dimension_numbers = #tpu.dot_dimension_numbers<[1], [0], [0], [1], [0, 0, 1, 1], [], []>} : vector<2x32xbf16>, vector<32x128xbf16>, vector<2x128xf32> -> vector<2x128xf32>
    %126 = arith.addf %123, %125 : vector<2x128xf32>
    %127 = arith.negf %126 : vector<2x128xf32>
    %128 = math.exp %127 : vector<2x128xf32>
    %cst_22 = arith.constant 1.000000e+00 : f32
    %129 = vector.broadcast %cst_22 : f32 to vector<2x128xf32>
    %130 = arith.addf %129, %128 : vector<2x128xf32>
    %131 = arith.divf %129, %130 : vector<2x128xf32>
    %132 = math.tanh %126 : vector<2x128xf32>
    %133 = vector.extract_strided_slice %131 {offsets = [0, 0], sizes = [2, 32], strides = [1, 1]} : vector<2x128xf32> to vector<2x32xf32>
    %134 = vector.extract_strided_slice %131 {offsets = [0, 32], sizes = [2, 32], strides = [1, 1]} : vector<2x128xf32> to vector<2x32xf32>
    %135 = vector.extract_strided_slice %132 {offsets = [0, 64], sizes = [2, 32], strides = [1, 1]} : vector<2x128xf32> to vector<2x32xf32>
    %136 = vector.extract_strided_slice %131 {offsets = [0, 96], sizes = [2, 32], strides = [1, 1]} : vector<2x128xf32> to vector<2x32xf32>
    %137 = arith.mulf %134, %120 : vector<2x32xf32>
    %138 = arith.mulf %133, %135 : vector<2x32xf32>
    %139 = arith.addf %137, %138 : vector<2x32xf32>
    %140 = math.tanh %139 : vector<2x32xf32>
    %141 = arith.mulf %136, %140 : vector<2x32xf32>
    %142 = vector.extract_strided_slice %6 {offsets = [14, 0], sizes = [2, 128], strides = [1, 1]} : vector<16x128xf32> to vector<2x128xf32>
    %143 = arith.truncf %141 : vector<2x32xf32> to vector<2x32xbf16>
    %cst_23 = arith.constant dense<0.000000e+00> : vector<2x128xf32>
    %144 = tpu.matmul %143, %0, %cst_23 {dimension_numbers = #tpu.dot_dimension_numbers<[1], [0], [0], [1], [0, 0, 1, 1], [], []>} : vector<2x32xbf16>, vector<32x128xbf16>, vector<2x128xf32> -> vector<2x128xf32>
    %145 = arith.addf %142, %144 : vector<2x128xf32>
    %146 = arith.negf %145 : vector<2x128xf32>
    %147 = math.exp %146 : vector<2x128xf32>
    %cst_24 = arith.constant 1.000000e+00 : f32
    %148 = vector.broadcast %cst_24 : f32 to vector<2x128xf32>
    %149 = arith.addf %148, %147 : vector<2x128xf32>
    %150 = arith.divf %148, %149 : vector<2x128xf32>
    %151 = math.tanh %145 : vector<2x128xf32>
    %152 = vector.extract_strided_slice %150 {offsets = [0, 0], sizes = [2, 32], strides = [1, 1]} : vector<2x128xf32> to vector<2x32xf32>
    %153 = vector.extract_strided_slice %150 {offsets = [0, 32], sizes = [2, 32], strides = [1, 1]} : vector<2x128xf32> to vector<2x32xf32>
    %154 = vector.extract_strided_slice %151 {offsets = [0, 64], sizes = [2, 32], strides = [1, 1]} : vector<2x128xf32> to vector<2x32xf32>
    %155 = vector.extract_strided_slice %150 {offsets = [0, 96], sizes = [2, 32], strides = [1, 1]} : vector<2x128xf32> to vector<2x32xf32>
    %156 = arith.mulf %153, %139 : vector<2x32xf32>
    %157 = arith.mulf %152, %154 : vector<2x32xf32>
    %158 = arith.addf %156, %157 : vector<2x32xf32>
    %159 = math.tanh %158 : vector<2x32xf32>
    %160 = arith.mulf %155, %159 : vector<2x32xf32>
    %c0_25 = arith.constant 0 : index
    %c0_26 = arith.constant 0 : index
    %161 = vector.load %arg7[%c0_25, %c0_26] : memref<4x32xf32, #tpu.memory_space<vmem>>, vector<4x32xf32>
    %162 = vector.extract_strided_slice %161 {offsets = [0, 0], sizes = [1, 32], strides = [1, 1]} : vector<4x32xf32> to vector<1x32xf32>
    %163 = vector.extract_strided_slice %161 {offsets = [1, 0], sizes = [1, 32], strides = [1, 1]} : vector<4x32xf32> to vector<1x32xf32>
    %164 = vector.extract_strided_slice %161 {offsets = [2, 0], sizes = [1, 32], strides = [1, 1]} : vector<4x32xf32> to vector<1x32xf32>
    %165 = vector.extract_strided_slice %161 {offsets = [3, 0], sizes = [1, 32], strides = [1, 1]} : vector<4x32xf32> to vector<1x32xf32>
    %c0_27 = arith.constant 0 : index
    %c0_28 = arith.constant 0 : index
    %166 = vector.load %arg8[%c0_27, %c0_28] : memref<1x2xf32, #tpu.memory_space<vmem>>, vector<1x1xf32>
    %c0_29 = arith.constant 0 : index
    %c1 = arith.constant 1 : index
    %167 = vector.load %arg8[%c0_29, %c1] : memref<1x2xf32, #tpu.memory_space<vmem>>, vector<1x1xf32>
    %168 = arith.truncf %160 : vector<2x32xf32> to vector<2x32xbf16>
    %c0_30 = arith.constant 0 : index
    %c0_31 = arith.constant 0 : index
    %169 = vector.load %arg6[%c0_30, %c0_31] : memref<32x32xbf16, #tpu.memory_space<vmem>>, vector<32x32xbf16>
    %cst_32 = arith.constant dense<0.000000e+00> : vector<2x32xf32>
    %170 = tpu.matmul %168, %169, %cst_32 {dimension_numbers = #tpu.dot_dimension_numbers<[1], [0], [0], [1], [0, 0, 1, 1], [], []>} : vector<2x32xbf16>, vector<32x32xbf16>, vector<2x32xf32> -> vector<2x32xf32>
    %171 = vector.broadcast %163 : vector<1x32xf32> to vector<2x32xf32>
    %172 = arith.addf %170, %171 : vector<2x32xf32>
    %cst_33 = arith.constant 0.000000e+00 : f32
    %173 = vector.broadcast %cst_33 : f32 to vector<2x32xf32>
    %174 = arith.maximumf %172, %173 : vector<2x32xf32>
    %175 = vector.broadcast %165 : vector<1x32xf32> to vector<2x32xf32>
    %176 = arith.mulf %174, %175 : vector<2x32xf32>
    %cst_34 = arith.constant dense<0.000000e+00> : vector<2xf32>
    %177 = vector.multi_reduction <add>, %176, %cst_34 [1] : vector<2x32xf32> to vector<2xf32>
    %178 = vector.shape_cast %177 : vector<2xf32> to vector<2x1xf32>
    %179 = vector.broadcast %167 : vector<1x1xf32> to vector<2x1xf32>
    %180 = arith.addf %178, %179 : vector<2x1xf32>
    %c0_35 = arith.constant 0 : index
    %c0_36 = arith.constant 0 : index
    %181 = vector.load %arg4[%c0_35, %c0_36] : memref<2x20xbf16, #tpu.memory_space<vmem>>, vector<2x20xbf16>
    %c0_37 = arith.constant 0 : index
    %c0_38 = arith.constant 0 : index
    %182 = vector.load %arg5[%c0_37, %c0_38] : memref<20x32xbf16, #tpu.memory_space<vmem>>, vector<20x32xbf16>
    %cst_39 = arith.constant dense<0.000000e+00> : vector<2x32xf32>
    %183 = tpu.matmul %181, %182, %cst_39 {dimension_numbers = #tpu.dot_dimension_numbers<[1], [0], [0], [1], [0, 0, 1, 1], [], []>} : vector<2x20xbf16>, vector<20x32xbf16>, vector<2x32xf32> -> vector<2x32xf32>
    %184 = vector.broadcast %162 : vector<1x32xf32> to vector<2x32xf32>
    %185 = arith.addf %183, %184 : vector<2x32xf32>
    %cst_40 = arith.constant 0.000000e+00 : f32
    %186 = vector.broadcast %cst_40 : f32 to vector<2x32xf32>
    %187 = arith.maximumf %185, %186 : vector<2x32xf32>
    %188 = vector.broadcast %164 : vector<1x32xf32> to vector<2x32xf32>
    %189 = arith.mulf %187, %188 : vector<2x32xf32>
    %cst_41 = arith.constant dense<0.000000e+00> : vector<2xf32>
    %190 = vector.multi_reduction <add>, %189, %cst_41 [1] : vector<2x32xf32> to vector<2xf32>
    %191 = vector.shape_cast %190 : vector<2xf32> to vector<2x1xf32>
    %192 = vector.broadcast %166 : vector<1x1xf32> to vector<2x1xf32>
    %193 = arith.addf %191, %192 : vector<2x1xf32>
    %194 = math.tanh %193 : vector<2x1xf32>
    %195 = arith.mulf %180, %194 : vector<2x1xf32>
    %c0_42 = arith.constant 0 : index
    %c0_43 = arith.constant 0 : index
    %196 = vector.load %arg9[%c0_42, %c0_43] : memref<2x1xf32, #tpu.memory_space<vmem>>, vector<2x1xf32>
    tpu.vector_store %arg9[%c0_42, %c0_43], %195 {strides = array<i32>} : memref<2x1xf32, #tpu.memory_space<vmem>>, vector<2x1xf32>,
    return
  }
}

</mosaic_0001>

<bundles_post_ra>
// kernel: tpu_custom_call.1
= control target key start
LH: loop header
LB: loop body
LE: loop exit
PB: predicated region body
PF: predicated region fallthrough
CT: control target
= control target key end

     0   :  { %14 = vsyncpa [#allocation3], 0  ;;  %s1583_s0 = inlined_call_operand.hbm [shape: bf16[16,32], index: 0, kind: input, shape index: {}]   ;;  %s1584_s1 = inlined_call_operand.hbm [shape: bf16[32,128], index: 1, kind: input, shape index: {}]   ;;  %s1585_s2 = inlined_call_operand.hbm [shape: bf16[32,128], index: 2, kind: input, shape index: {}]   ;;  %s1586_s3 = inlined_call_operand.vmem [shape: f32[1,128], index: 3, kind: input, shape index: {}]   ;;  %s1587_s4 = inlined_call_operand.vmem [shape: bf16[2,20], index: 4, kind: input, shape index: {}]   ;;  %s1588_s5 = inlined_call_operand.hbm [shape: bf16[20,32], index: 5, kind: input, shape index: {}]   ;;  %s1589_s6 = inlined_call_operand.vmem [shape: bf16[32,32], index: 6, kind: input, shape index: {}]   ;;  %s1590_s7 = inlined_call_operand.vmem [shape: f32[4,32], index: 7, kind: input, shape index: {}]   ;;  %s1591_s8 = inlined_call_operand.vmem [shape: f32[1,2], index: 8, kind: input, shape index: {}]   ;;  %s1592_s9 = inlined_call_operand.vmem [shape: f32[2,1], index: 9, kind: output, shape index: {}]  }
   0x1   :  { %15 = vsyncpa [#allocation5], 0 }
   0x2   :  { %16 = vsyncpa [#allocation8], 0  ;;  %s1307_s30 = smov [#allocation4]   ;;  %s1308_s11 = smov [#allocation2]  }
   0x3   :  { %s34_s10 = sshll.u32 %s1307_s30, 4  ;;  %s22_s12 = sshll.u32 %s1308_s11, 4  ;;  %s35_s10 = int_to_ptr.vmem [resolvable:$true] %s34_s10  ;;  %s1369_s12 = int_to_ptr.vmem [resolvable:$true] %s22_s12 }
   0x4   :  { %s1213_s15 = scalar_lea.hbm %s1584_s1, 256 }
   0x5   :  { %p1214_p0 = scmp.ne.s32.totalorder %s1584_s1, %s1213_s15  ;;  %p1217_p1 = scmp.lt.u32.totalorder %s1213_s15, %s1584_s1 }
   0x7   :  { %p1219_p2 = pnand %p1217_p1, %p1214_p0 }
   0x9   :  { %1222 = shalt.err (!%p1219_p2)
}
   0xa   :  { %s1223_s20 = scalar_lea.vmem %s35_s10, 256  ;;  %p1228_p4 = scmp.lt.s32.totalorder %s35_s10, %s35_s10 }
   0xb   :  { %p1224_p3 = scmp.ne.s32.totalorder %s35_s10, %s1223_s20  ;;  %p1229_p5 = scmp.lt.s32.totalorder %s1223_s20, %s1223_s20 }
   0xd   :  { %p1230_p6 = por %p1229_p5, %p1228_p4 }
   0xf   :  { %p1231_p7 = pnand %p1230_p6, %p1224_p3 }
  0x11   :  { %1234 = shalt.err (!%p1231_p7)
}
  0x12   :  { %s1309_s21 = smov 64   ;;  %s1310_s22 = smov 4  }
  0x13   :  { %40 = dma.hbm_to_vmem [thread:$0]  %s1584_s1, 256, %s35_s10, [#allocation5], %s1309_s21, %s1309_s21, %s1310_s22  }
  0x14   :  { %s1235_s27 = scalar_lea.hbm %s1583_s0, 128 }
  0x15   :  { %p1236_p8 = scmp.ne.s32.totalorder %s1583_s0, %s1235_s27  ;;  %p1239_p9 = scmp.lt.u32.totalorder %s1235_s27, %s1583_s0 }
  0x17   :  { %p1241_p10 = pnand %p1239_p9, %p1236_p8 }
  0x19   :  { %1244 = shalt.err (!%p1241_p10)
}
  0x1a   :  { %s1245_s13 = scalar_lea.vmem %s1369_s12, 128  ;;  %p1250_p12 = scmp.lt.s32.totalorder %s1369_s12, %s1369_s12 }
  0x1b   :  { %p1246_p11 = scmp.ne.s32.totalorder %s1369_s12, %s1245_s13  ;;  %p1251_p13 = scmp.lt.s32.totalorder %s1245_s13, %s1245_s13 }
  0x1d   :  { %p1252_p0 = por %p1251_p13, %p1250_p12 }
  0x1f   :  { %p1253_p1 = pnand %p1252_p0, %p1246_p11 }
  0x21   :  { %1256 = shalt.err (!%p1253_p1)
}
  0x22   :  { %28 = dma.hbm_to_vmem [thread:$0]  %s1583_s0, 128, %s1369_s12, [#allocation3], %s1309_s21, %s1309_s21, %s1310_s22  }
  0x23   :  { %s1311_s14 = smov [#allocation6]   ;;  %s1312_s16 = smov [#allocation7]  }
  0x24   :  { %s46_s15 = sshll.u32 %s1311_s14, 4  ;;  %s62_s17 = sshll.u32 %s1312_s16, 4  ;;  %s47_s15 = int_to_ptr.vmem [resolvable:$true] %s46_s15  ;;  %s1406_s17 = int_to_ptr.vmem [resolvable:$true] %s62_s17 }
  0x25   :  { %s1257_s20 = scalar_lea.hbm %s1585_s2, 256 }
  0x26   :  { %p1258_p2 = scmp.ne.s32.totalorder %s1585_s2, %s1257_s20  ;;  %p1261_p3 = scmp.lt.u32.totalorder %s1257_s20, %s1585_s2 }
  0x28   :  { %p1263_p4 = pnand %p1261_p3, %p1258_p2 }
  0x2a   :  { %1266 = shalt.err (!%p1263_p4)
}
  0x2b   :  { %s1267_s0 = scalar_lea.vmem %s47_s15, 256  ;;  %p1272_p6 = scmp.lt.s32.totalorder %s47_s15, %s47_s15 }
  0x2c   :  { %p1268_p5 = scmp.ne.s32.totalorder %s47_s15, %s1267_s0  ;;  %p1273_p7 = scmp.lt.s32.totalorder %s1267_s0, %s1267_s0 }
  0x2e   :  { %p1274_p8 = por %p1273_p7, %p1272_p6 }
  0x30   :  { %p1275_p9 = pnand %p1274_p8, %p1268_p5 }
  0x32   :  { %1278 = shalt.err (!%p1275_p9)
}
  0x33   :  { %52 = dma.hbm_to_vmem [thread:$0]  %s1585_s2, 256, %s47_s15, [#allocation5], %s1309_s21, %s1309_s21, %s1310_s22  }
  0x34   :  { %s1279_s30 = scalar_lea.hbm %s1588_s5, 192 }
  0x35   :  { %p1280_p10 = scmp.ne.s32.totalorder %s1588_s5, %s1279_s30  ;;  %p1283_p11 = scmp.lt.u32.totalorder %s1279_s30, %s1588_s5 }
  0x37   :  { %p1285_p12 = pnand %p1283_p11, %p1280_p10 }
  0x39   :  { %1288 = shalt.err (!%p1285_p12)
}
  0x3a   :  { %s1289_s14 = scalar_lea.vmem %s1406_s17, 192  ;;  %p1294_p0 = scmp.lt.s32.totalorder %s1406_s17, %s1406_s17 }
  0x3b   :  { %p1290_p13 = scmp.ne.s32.totalorder %s1406_s17, %s1289_s14  ;;  %p1295_p1 = scmp.lt.s32.totalorder %s1289_s14, %s1289_s14 }
  0x3d   :  { %p1296_p2 = por %p1295_p1, %p1294_p0 }
  0x3f   :  { %p1297_p3 = pnand %p1296_p2, %p1290_p13 }
  0x41   :  { %1300 = shalt.err (!%p1297_p3)
}
  0x42   :  { %68 = dma.hbm_to_vmem [thread:$0]  %s1588_s5, 192, %s1406_s17, [#allocation8], %s1309_s21, %s1309_s21, %s1310_s22  }
  0x43   :  { %1301 = dma.done.wait [#allocation3], 128  }
  0x44   :  { %1302 = vsyncadd [#allocation3], 4294967168 }
  0x45   :  { %1303 = dma.done.wait [#allocation5], 512  }
  0x46   :  { %1304 = vsyncadd [#allocation5], 4294966784 }
  0x47   :  { %1305 = dma.done.wait [#allocation8], 192  }
  0x48   :  { %1306 = vsyncadd [#allocation8], 4294967104  ;;  %v1313_v0 = vmov 0.0   ;;  %vm1314_vm0 = vmmov 0   ;;  %v1138_v1 = vld [vmem:[#allocation4] sm:$0xff]   ;;  %v1449_v2 = vld [vmem:[#allocation6] sm:$0xff]  }
  0x49   :  { %1038 = vmatprep.subr.bf16.mxu0 %v1313_v0  ;;  %1046 = vmatprep.subr.bf16.mxu1 %v1313_v0  ;;  %v1140_v3 = vld [vmem:[#allocation4 + $0x8] sm:$0xff]   ;;  %v1453_v4 = vld [vmem:[#allocation6 + $0x8] sm:$0xff]   ;;  %vm122_vm1 = vcmask 261120   ;;  %v1315_v6 = vmov 0   ;;  %vm903_vm2 = vcmask 1041408   ;;  %vm899_vm3 = vcmask 162816  }
  0x4a   :  { %1042 = vmatprep.mubr.msk.bf16.mxu0 %vm1314_vm0, %v1313_v0  ;;  %1050 = vmatprep.mubr.msk.bf16.mxu1 %vm1314_vm0, %v1313_v0  ;;  %v1142_v5 = vld [vmem:[#allocation2] sm:$0xff]   ;;  %v976_v7 = vld [vmem:[%s1586_s3] ss:$0 sm:$0xff]  ;;  %s1316_s3 = smov 32   ;;  %vm871_vm4 = vcmask 254976   ;;  %vm967_vm5 = vcmask 1024  }
  0x4b   :  { %1039 = vmatpush3.bf16.msra.mxu0 %v1138_v1  ;;  %1047 = vmatpush3.bf16.msra.mxu1 %v1449_v2 }
  0x4c   :  { %1040 = vmatprep.subr.bf16.mxu0 %v1313_v0  ;;  %1048 = vmatprep.subr.bf16.mxu1 %v1313_v0 }
  0x4f   :  { %1041 = vmatpush3.bf16.msra.mxu0 %v1140_v3  ;;  %1049 = vmatpush3.bf16.msra.mxu1 %v1453_v4 }
  0x50   :  { %1054 = vmatprep.subr.bf16.mxu0 %v1313_v0  ;;  %1062 = vmatprep.subr.bf16.mxu1 %v1313_v0 }
  0x52   :  { %1043 = vmatmul.mubr.msk.bf16.vlgmr.msra.gmra.mrb[0].mxu0 %vm122_vm1, %v1142_v5  ;;  %1051 = vmatmul.mubr.bf16.vlgmr.msra.gmra.mrb[0].mxu1 %v1315_v6 }
  0x53   :  { %1055 = vmatpush3.bf16.msra.mxu0 %v1449_v2  ;;  %1058 = vmatprep.mubr.msk.bf16.mxu0 %vm1314_vm0, %v1313_v0 }
  0x54   :  { %1056 = vmatprep.subr.bf16.mxu0 %v1313_v0  ;;  %1063 = vmatpush3.bf16.msra.mxu1 %v1449_v2 }
  0x55   :  { %1066 = vmatprep.mubr.msk.bf16.mxu1 %vm1314_vm0, %v1313_v0  ;;  %1064 = vmatprep.subr.bf16.mxu1 %v1313_v0 }
  0x57   :  { %1057 = vmatpush3.bf16.msra.mxu0 %v1453_v4 }
  0x58   :  { %1070 = vmatprep.subr.bf16.mxu0 %v1313_v0  ;;  %1065 = vmatpush3.bf16.msra.mxu1 %v1453_v4 }
  0x59   :  { %1078 = vmatprep.subr.bf16.mxu1 %v1313_v0 }
 0x125   :  { %v160_v8 = vpop.f32.mrb[0].mxu0  ;;  %v216_v10 = vpop.f32.mrb[0].mxu1 }
 0x126   :  { %v1475_v9 = vadd.f32 %v976_v7, %v160_v8  ;;  %v1044_v11 = vpop.f32.mrb[1].mxu0  ;;  %v1052_v12 = vpop.f32.mrb[1].mxu1 }
 0x127   :  { %v163_v13 = vpop.f32.mrb[2].mxu0  ;;  %v219_v16 = vpop.f32.mrb[2].mxu1 }
 0x128   :  { %v222_v14 = vadd.f32 %v216_v10, %v1475_v9  ;;  %v1478_v15 = vadd.f32 %v976_v7, %v163_v13  ;;  %v1045_v17 = vpop.f32.mrb[3].mxu0  ;;  %v1053_v18 = vpop.f32.mrb[3].mxu1 }
 0x12a   :  { %1147 = vtanh.f32 %v222_v14  ;;  %v983_v20 = vmul.f32 -1.442695, %v222_v14 }
 0x12c   :  { %1149 = vpow2.f32 %v983_v20 }
 0x134   :  { %v1148_v19 = vpop.eup %1147 }
 0x135   :  { %232 = vrot.lane.b32.xlu0 %v1148_v19, %s1309_s21 }
 0x136   :  { %v1150_v21 = vpop.eup %1149 }
 0x137   :  { %v226_v22 = vadd.f32 1.0, %v1150_v21 }
 0x139   :  { %1151 = vrcp.f32 %v226_v22 }
 0x143   :  { %v1152_v23 = vpop.eup %1151 }
 0x144   :  { %v230_v26 = vmul.f32 0.0, %v1152_v23 }
 0x1a7   :  { %v233_v24 = vpop.permute.xlu0 %232 }
 0x1a8   :  { %v235_v25 = vmul.f32 %v1152_v23, %v233_v24 }
 0x1aa   :  { %237 = vrot.lane.b32.xlu0 %v235_v25, %s1316_s3 }
 0x21c   :  { %v238_v27 = vpop.permute.xlu0 %237 }
 0x21d   :  { %v240_v28 = vadd.f32 %v238_v27, %v230_v26 }
 0x21f   :  { %1153 = vtanh.f32 %v240_v28  ;;  %v306_v47 = vrot.slane %v240_v28, 6 }
 0x229   :  { %v1154_v29 = vpop.eup %1153 }
 0x22a   :  { %243 = vrot.lane.b32.xlu1 %v1154_v29, %s1309_s21 }
 0x29c   :  { %v244_v30 = vpop.permute.xlu1 %243 }
 0x29d   :  { %v246_v31 = vmul.f32 %v1152_v23, %v244_v30 }
 0x29f   :  { %v247_v32 = vpack.c.bf16 %v246_v31, %v246_v31 }
 0x2a1   :  { %249 = vrot.lane.b32.xlu1 %v247_v32, %s1316_s3 }
 0x313   :  { %v250_v33 = vpop.permute.xlu1 %249 }
 0x314   :  { %1059 = vmatmul.mubr.msk.bf16.vlgmr.msra.gmra.mrb[4].mxu0 %vm122_vm1, %v250_v33 }
 0x315   :  { %1071 = vmatpush3.bf16.msra.mxu0 %v1449_v2  ;;  %1074 = vmatprep.mubr.msk.bf16.mxu0 %vm1314_vm0, %v1313_v0 }
 0x316   :  { %1072 = vmatprep.subr.bf16.mxu0 %v1313_v0 }
 0x319   :  { %1073 = vmatpush3.bf16.msra.mxu0 %v1453_v4 }
 0x31a   :  { %1086 = vmatprep.subr.bf16.mxu0 %v1313_v0 }
 0x3e7   :  { %v288_v34 = vpop.f32.mrb[4].mxu0 }
 0x3e8   :  { %v295_v35 = vrot.slane %v288_v34, 6  ;;  %v1060_v36 = vpop.f32.mrb[5].mxu0 }
 0x3e9   :  { %v291_v37 = vpop.f32.mrb[6].mxu0 }
 0x3ea   :  { %v297_v38 = vadd.f32 %v295_v35, %v1475_v9  ;;  %v1061_v39 = vpop.f32.mrb[7].mxu0 }
 0x3ec   :  { %1155 = vtanh.f32 %v297_v38  ;;  %v985_v41 = vmul.f32 -1.442695, %v297_v38 }
 0x3ee   :  { %1157 = vpow2.f32 %v985_v41 }
 0x3f6   :  { %v1156_v40 = vpop.eup %1155 }
 0x3f7   :  { %310 = vrot.lane.b32.xlu0 %v1156_v40, %s1309_s21 }
 0x3f8   :  { %v1158_v42 = vpop.eup %1157 }
 0x3f9   :  { %v301_v43 = vadd.f32 1.0, %v1158_v42 }
 0x3fb   :  { %1159 = vrcp.f32 %v301_v43 }
 0x405   :  { %v1160_v44 = vpop.eup %1159 }
 0x406   :  { %v308_v48 = vmul.f32 %v1160_v44, %v306_v47 }
 0x469   :  { %v311_v45 = vpop.permute.xlu0 %310 }
 0x46a   :  { %v313_v46 = vmul.f32 %v1160_v44, %v311_v45 }
 0x46c   :  { %315 = vrot.lane.b32.xlu1 %v313_v46, %s1316_s3 }
 0x4de   :  { %v316_v49 = vpop.permute.xlu1 %315 }
 0x4df   :  { %v318_v50 = vadd.f32 %v316_v49, %v308_v48 }
 0x4e1   :  { %1161 = vtanh.f32 %v318_v50  ;;  %v385_v10 = vrot.slane %v318_v50, 6 }
 0x4eb   :  { %v1162_v51 = vpop.eup %1161 }
 0x4ec   :  { %321 = vrot.lane.b32.xlu0 %v1162_v51, %s1309_s21 }
 0x55e   :  { %v322_v52 = vpop.permute.xlu0 %321 }
 0x55f   :  { %v324_v53 = vmul.f32 %v1160_v44, %v322_v52 }
 0x561   :  { %v325_v54 = vpack.c.bf16 %v324_v53, %v324_v53 }
 0x563   :  { %v327_v55 = vrot.slane %v325_v54, 1 }
 0x565   :  { %328 = vrot.lane.b32.xlu1 %v327_v55, %s1316_s3 }
 0x5d7   :  { %v329_v56 = vpop.permute.xlu1 %328 }
 0x5d8   :  { %1067 = vmatmul.mubr.msk.bf16.vlgmr.msra.gmra.mrb[4].mxu1 %vm122_vm1, %v329_v56 }
 0x5d9   :  { %1079 = vmatpush3.bf16.msra.mxu1 %v1449_v2  ;;  %1082 = vmatprep.mubr.msk.bf16.mxu1 %vm1314_vm0, %v1313_v0 }
 0x5da   :  { %1080 = vmatprep.subr.bf16.mxu1 %v1313_v0 }
 0x5dd   :  { %1081 = vmatpush3.bf16.msra.mxu1 %v1453_v4 }
 0x5de   :  { %1094 = vmatprep.subr.bf16.mxu1 %v1313_v0 }
 0x6ab   :  { %v367_v57 = vpop.f32.mrb[4].mxu1 }
 0x6ac   :  { %v374_v58 = vrot.slane %v367_v57, 4  ;;  %v1068_v59 = vpop.f32.mrb[5].mxu1 }
 0x6ad   :  { %v370_v60 = vpop.f32.mrb[6].mxu1 }
 0x6ae   :  { %v376_v61 = vadd.f32 %v374_v58, %v1475_v9  ;;  %v1069_v62 = vpop.f32.mrb[7].mxu1 }
 0x6b0   :  { %1163 = vtanh.f32 %v376_v61  ;;  %v987_v1 = vmul.f32 -1.442695, %v376_v61 }
 0x6b2   :  { %1165 = vpow2.f32 %v987_v1 }
 0x6ba   :  { %v1164_v63 = vpop.eup %1163 }
 0x6bb   :  { %389 = vrot.lane.b32.xlu0 %v1164_v63, %s1309_s21 }
 0x6bc   :  { %v1166_v3 = vpop.eup %1165 }
 0x6bd   :  { %v380_v5 = vadd.f32 1.0, %v1166_v3 }
 0x6bf   :  { %1167 = vrcp.f32 %v380_v5 }
 0x6c9   :  { %v1168_v6 = vpop.eup %1167 }
 0x6ca   :  { %v387_v11 = vmul.f32 %v1168_v6, %v385_v10 }
 0x72d   :  { %v390_v7 = vpop.permute.xlu0 %389 }
 0x72e   :  { %v392_v8 = vmul.f32 %v1168_v6, %v390_v7 }
 0x730   :  { %394 = vrot.lane.b32.xlu1 %v392_v8, %s1316_s3 }
 0x7a2   :  { %v395_v12 = vpop.permute.xlu1 %394 }
 0x7a3   :  { %v397_v13 = vadd.f32 %v395_v12, %v387_v11 }
 0x7a5   :  { %1169 = vtanh.f32 %v397_v13  ;;  %v464_v34 = vrot.slane %v397_v13, 6 }
 0x7af   :  { %v1170_v14 = vpop.eup %1169 }
 0x7b0   :  { %400 = vrot.lane.b32.xlu0 %v1170_v14, %s1309_s21 }
 0x822   :  { %v401_v16 = vpop.permute.xlu0 %400 }
 0x823   :  { %v403_v17 = vmul.f32 %v1168_v6, %v401_v16 }
 0x825   :  { %v404_v18 = vpack.c.bf16 %v403_v17, %v403_v17 }
 0x827   :  { %v406_v19 = vrot.slane %v404_v18, 2 }
 0x829   :  { %407 = vrot.lane.b32.xlu1 %v406_v19, %s1316_s3 }
 0x89b   :  { %v408_v20 = vpop.permute.xlu1 %407 }
 0x89c   :  { %1075 = vmatmul.mubr.msk.bf16.vlgmr.msra.gmra.mrb[8].mxu0 %vm122_vm1, %v408_v20 }
 0x89d   :  { %1087 = vmatpush3.bf16.msra.mxu0 %v1449_v2  ;;  %1090 = vmatprep.mubr.msk.bf16.mxu0 %vm1314_vm0, %v1313_v0 }
 0x89e   :  { %1088 = vmatprep.subr.bf16.mxu0 %v1313_v0 }
 0x8a1   :  { %1089 = vmatpush3.bf16.msra.mxu0 %v1453_v4 }
 0x8a2   :  { %1102 = vmatprep.subr.bf16.mxu0 %v1313_v0 }
 0x96f   :  { %v446_v21 = vpop.f32.mrb[8].mxu0 }
 0x970   :  { %v453_v22 = vrot.slane %v446_v21, 2  ;;  %v1076_v23 = vpop.f32.mrb[9].mxu0 }
 0x971   :  { %v449_v24 = vpop.f32.mrb[10].mxu0 }
 0x972   :  { %v455_v25 = vadd.f32 %v453_v22, %v1475_v9  ;;  %v1077_v26 = vpop.f32.mrb[11].mxu0 }
 0x974   :  { %1171 = vtanh.f32 %v455_v25  ;;  %v989_v28 = vmul.f32 -1.442695, %v455_v25 }
 0x976   :  { %1173 = vpow2.f32 %v989_v28 }
 0x97e   :  { %v1172_v27 = vpop.eup %1171 }
 0x97f   :  { %468 = vrot.lane.b32.xlu0 %v1172_v27, %s1309_s21 }
 0x980   :  { %v1174_v29 = vpop.eup %1173 }
 0x981   :  { %v459_v30 = vadd.f32 1.0, %v1174_v29 }
 0x983   :  { %1175 = vrcp.f32 %v459_v30 }
 0x98d   :  { %v1176_v31 = vpop.eup %1175 }
 0x98e   :  { %v466_v35 = vmul.f32 %v1176_v31, %v464_v34 }
 0x9f1   :  { %v469_v32 = vpop.permute.xlu0 %468 }
 0x9f2   :  { %v471_v33 = vmul.f32 %v1176_v31, %v469_v32 }
 0x9f4   :  { %473 = vrot.lane.b32.xlu1 %v471_v33, %s1316_s3 }
 0xa66   :  { %v474_v36 = vpop.permute.xlu1 %473 }
 0xa67   :  { %v476_v37 = vadd.f32 %v474_v36, %v466_v35 }
 0xa69   :  { %1177 = vtanh.f32 %v476_v37  ;;  %v540_v55 = vrot.slane %v476_v37, 6 }
 0xa73   :  { %v1178_v9 = vpop.eup %1177 }
 0xa74   :  { %479 = vrot.lane.b32.xlu0 %v1178_v9, %s1309_s21 }
 0xae6   :  { %v480_v38 = vpop.permute.xlu0 %479 }
 0xae7   :  { %v482_v39 = vmul.f32 %v1176_v31, %v480_v38 }
 0xae9   :  { %v483_v40 = vpack.c.bf16 %v482_v39, %v482_v39 }
 0xaeb   :  { %v485_v41 = vrot.slane %v483_v40, 3 }
 0xaed   :  { %486 = vrot.lane.b32.xlu1 %v485_v41, %s1316_s3 }
 0xb5f   :  { %v487_v42 = vpop.permute.xlu1 %486 }
 0xb60   :  { %1083 = vmatmul.mubr.msk.bf16.vlgmr.msra.gmra.mrb[8].mxu1 %vm122_vm1, %v487_v42 }
 0xb61   :  { %1095 = vmatpush3.bf16.msra.mxu1 %v1449_v2  ;;  %1098 = vmatprep.mubr.msk.bf16.mxu1 %vm1314_vm0, %v1313_v0 }
 0xb62   :  { %1096 = vmatprep.subr.bf16.mxu1 %v1313_v0 }
 0xb65   :  { %1097 = vmatpush3.bf16.msra.mxu1 %v1453_v4 }
 0xb66   :  { %1110 = vmatprep.subr.bf16.mxu1 %v1313_v0 }
 0xc33   :  { %v525_v43 = vpop.f32.mrb[8].mxu1 }
 0xc34   :  { %v531_v44 = vadd.f32 %v525_v43, %v1478_v15  ;;  %v1084_v45 = vpop.f32.mrb[9].mxu1 }
 0xc35   :  { %v528_v46 = vpop.f32.mrb[10].mxu1 }
 0xc36   :  { %1179 = vtanh.f32 %v531_v44  ;;  %v1085_v47 = vpop.f32.mrb[11].mxu1  ;;  %v991_v49 = vmul.f32 -1.442695, %v531_v44 }
 0xc38   :  { %1181 = vpow2.f32 %v991_v49 }
 0xc40   :  { %v1180_v48 = vpop.eup %1179 }
 0xc41   :  { %544 = vrot.lane.b32.xlu0 %v1180_v48, %s1309_s21 }
 0xc42   :  { %v1182_v50 = vpop.eup %1181 }
 0xc43   :  { %v535_v51 = vadd.f32 1.0, %v1182_v50 }
 0xc45   :  { %1183 = vrcp.f32 %v535_v51 }
 0xc4f   :  { %v1184_v52 = vpop.eup %1183 }
 0xc50   :  { %v542_v56 = vmul.f32 %v1184_v52, %v540_v55 }
 0xcb3   :  { %v545_v53 = vpop.permute.xlu0 %544 }
 0xcb4   :  { %v547_v54 = vmul.f32 %v1184_v52, %v545_v53 }
 0xcb6   :  { %549 = vrot.lane.b32.xlu1 %v547_v54, %s1316_s3 }
 0xd28   :  { %v550_v57 = vpop.permute.xlu1 %549 }
 0xd29   :  { %v552_v58 = vadd.f32 %v550_v57, %v542_v56 }
 0xd2b   :  { %1185 = vtanh.f32 %v552_v58  ;;  %v618_v16 = vrot.slane %v552_v58, 6 }
 0xd35   :  { %v1186_v59 = vpop.eup %1185 }
 0xd36   :  { %555 = vrot.lane.b32.xlu0 %v1186_v59, %s1309_s21 }
 0xda8   :  { %v556_v60 = vpop.permute.xlu0 %555 }
 0xda9   :  { %v558_v61 = vmul.f32 %v1184_v52, %v556_v60 }
 0xdab   :  { %v559_v62 = vpack.c.bf16 %v558_v61, %v558_v61  ;;  %v1143_v61 = vld [vmem:[#allocation7] sm:$0xff]  }
 0xdad   :  { %561 = vrot.lane.b32.xlu1 %v559_v62, %s1316_s3  ;;  %v1144_v62 = vld [vmem:[#allocation7 + $0x8] ss:$0 sps:$4 sm:$0x33]  }
 0xe1f   :  { %v562_v63 = vpop.permute.xlu1 %561 }
 0xe20   :  { %1091 = vmatmul.mubr.msk.bf16.vlgmr.msra.gmra.mrb[12].mxu0 %vm122_vm1, %v562_v63  ;;  %v882_v63 = vld [vmem:[%s1587_s4] sm:$0x1] }
 0xe21   :  { %1103 = vmatpush3.bf16.msra.mxu0 %v1449_v2  ;;  %1106 = vmatprep.mubr.msk.bf16.mxu0 %vm1314_vm0, %v1313_v0 }
 0xe22   :  { %1104 = vmatprep.subr.bf16.mxu0 %v1313_v0 }
 0xe25   :  { %1105 = vmatpush3.bf16.msra.mxu0 %v1453_v4 }
 0xe26   :  { %1118 = vmatprep.subr.bf16.mxu0 %v1313_v0 }
 0xef3   :  { %v600_v1 = vpop.f32.mrb[12].mxu0 }
 0xef4   :  { %v607_v3 = vrot.slane %v600_v1, 6  ;;  %v1092_v5 = vpop.f32.mrb[13].mxu0 }
 0xef5   :  { %v603_v6 = vpop.f32.mrb[14].mxu0 }
 0xef6   :  { %v609_v7 = vadd.f32 %v607_v3, %v1478_v15  ;;  %v1093_v8 = vpop.f32.mrb[15].mxu0 }
 0xef7   :  { %v1146_v8 = vld [vmem:[%s1589_s6 + $0x8] sm:$0xff]  }
 0xef8   :  { %1187 = vtanh.f32 %v609_v7  ;;  %v993_v2 = vmul.f32 -1.442695, %v609_v7  ;;  %v1145_v7 = vld [vmem:[%s1589_s6] sm:$0xff]  }
 0xefa   :  { %1189 = vpow2.f32 %v993_v2  ;;  %v802_v2 = vlaneseq }
 0xf02   :  { %v1188_v10 = vpop.eup %1187 }
 0xf03   :  { %622 = vrot.lane.b32.xlu0 %v1188_v10, %s1309_s21 }
 0xf04   :  { %v1190_v11 = vpop.eup %1189 }
 0xf05   :  { %v613_v12 = vadd.f32 1.0, %v1190_v11 }
 0xf07   :  { %1191 = vrcp.f32 %v613_v12 }
 0xf11   :  { %v1192_v13 = vpop.eup %1191 }
 0xf12   :  { %v620_v17 = vmul.f32 %v1192_v13, %v618_v16 }
 0xf75   :  { %v623_v4 = vpop.permute.xlu0 %622 }
 0xf76   :  { %v625_v14 = vmul.f32 %v1192_v13, %v623_v4 }
 0xf78   :  { %627 = vrot.lane.b32.xlu1 %v625_v14, %s1316_s3  ;;  %v795_v14 = vld [vmem:[%s1590_s7] sm:$0xf] }
 0xfea   :  { %v628_v18 = vpop.permute.xlu1 %627 }
 0xfeb   :  { %v630_v19 = vadd.f32 %v628_v18, %v620_v17 }
 0xfed   :  { %1193 = vtanh.f32 %v630_v19  ;;  %v697_v38 = vrot.slane %v630_v19, 6 }
 0xff7   :  { %v1194_v20 = vpop.eup %1193 }
 0xff8   :  { %633 = vrot.lane.b32.xlu0 %v1194_v20, %s1309_s21 }
0x106a   :  { %v634_v21 = vpop.permute.xlu0 %633 }
0x106b   :  { %v636_v22 = vmul.f32 %v1192_v13, %v634_v21  ;;  %v803_v13 = vshrl.u32 %v802_v2, 7 }
0x106d   :  { %v637_v23 = vpack.c.bf16 %v636_v22, %v636_v22  ;;  %v888_v17 = vsub.s32 0, %v803_v13  ;;  %v950_v18 = vsub.s32 2, %v803_v13 }
0x106f   :  { %v639_v24 = vrot.slane %v637_v23, 1  ;;  %v889_v20 = vrot.slane %v795_v14, %v888_v17  ;;  %v951_v22 = vrot.slane %v795_v14, %v950_v18 }
0x1071   :  { %640 = vrot.lane.b32.xlu1 %v639_v24, %s1316_s3 }
0x10e3   :  { %v641_v25 = vpop.permute.xlu1 %640 }
0x10e4   :  { %1099 = vmatmul.mubr.msk.bf16.vlgmr.msra.gmra.mrb[12].mxu1 %vm122_vm1, %v641_v25 }
0x10e5   :  { %1114 = vmatprep.mubr.msk.bf16.mxu1 %vm1314_vm0, %v1313_v0  ;;  %1111 = vmatpush3.bf16.msra.mxu1 %v1145_v7 }
0x10e6   :  { %1112 = vmatprep.subr.bf16.mxu1 %v1313_v0 }
0x10e9   :  { %1113 = vmatpush3.bf16.msra.mxu1 %v1146_v8 }
0x11b7   :  { %v679_v26 = vpop.f32.mrb[12].mxu1 }
0x11b8   :  { %v686_v27 = vrot.slane %v679_v26, 4  ;;  %v1100_v28 = vpop.f32.mrb[13].mxu1 }
0x11b9   :  { %v682_v29 = vpop.f32.mrb[14].mxu1 }
0x11ba   :  { %v688_v30 = vadd.f32 %v686_v27, %v1478_v15  ;;  %v1101_v31 = vpop.f32.mrb[15].mxu1  ;;  %v1001_v29 = vld [vmem:[%s1591_s8] ss:$0 sm:$0xff]  ;;  %s1318_s8 = smov 127  }
0x11bc   :  { %1195 = vtanh.f32 %v688_v30  ;;  %v995_v33 = vmul.f32 -1.442695, %v688_v30 }
0x11be   :  { %1197 = vpow2.f32 %v995_v33  ;;  %v804_v33 = vsub.s32 1, %v803_v13 }
0x11c6   :  { %v1196_v32 = vpop.eup %1195 }
0x11c7   :  { %701 = vrot.lane.b32.xlu0 %v1196_v32, %s1309_s21 }
0x11c8   :  { %v1198_v34 = vpop.eup %1197 }
0x11c9   :  { %v692_v35 = vadd.f32 1.0, %v1198_v34  ;;  %v805_v34 = vrot.slane %v795_v14, %v804_v33 }
0x11cb   :  { %1199 = vrcp.f32 %v692_v35  ;;  %v868_v35 = vsub.s32 3, %v803_v13 }
0x11d5   :  { %v1200_v36 = vpop.eup %1199 }
0x11d6   :  { %v699_v39 = vmul.f32 %v1200_v36, %v697_v38  ;;  %v869_v38 = vrot.slane %v795_v14, %v868_v35 }
0x1239   :  { %v702_v37 = vpop.permute.xlu0 %701 }
0x123a   :  { %v704_v9 = vmul.f32 %v1200_v36, %v702_v37 }
0x123c   :  { %706 = vrot.lane.b32.xlu1 %v704_v9, %s1316_s3 }
0x12ae   :  { %v707_v40 = vpop.permute.xlu1 %706 }
0x12af   :  { %v709_v41 = vadd.f32 %v707_v40, %v699_v39 }
0x12b1   :  { %1201 = vtanh.f32 %v709_v41  ;;  %v776_v1 = vrot.slane %v709_v41, 6 }
0x12bb   :  { %v1202_v42 = vpop.eup %1201 }
0x12bc   :  { %712 = vrot.lane.b32.xlu0 %v1202_v42, %s1309_s21 }
0x132e   :  { %v713_v43 = vpop.permute.xlu0 %712 }
0x132f   :  { %v715_v44 = vmul.f32 %v1200_v36, %v713_v43 }
0x1331   :  { %v716_v45 = vpack.c.bf16 %v715_v44, %v715_v44 }
0x1333   :  { %v718_v46 = vrot.slane %v716_v45, 2 }
0x1335   :  { %719 = vrot.lane.b32.xlu1 %v718_v46, %s1316_s3 }
0x13a7   :  { %v720_v47 = vpop.permute.xlu1 %719 }
0x13a8   :  { %1107 = vmatmul.mubr.msk.bf16.vlgmr.msra.gmra.mrb[16].mxu0 %vm122_vm1, %v720_v47 }
0x13a9   :  { %1122 = vmatprep.mubr.msk.bf16.mxu0 %vm1314_vm0, %v1313_v0  ;;  %1119 = vmatpush3.bf16.msra.mxu0 %v1143_v61 }
0x13aa   :  { %1120 = vmatprep.subr.bf16.mxu0 %v1313_v0 }
0x147b   :  { %v758_v48 = vpop.f32.mrb[16].mxu0 }
0x147c   :  { %v765_v49 = vrot.slane %v758_v48, 2  ;;  %v1108_v50 = vpop.f32.mrb[17].mxu0 }
0x147d   :  { %v761_v51 = vpop.f32.mrb[18].mxu0 }
0x147e   :  { %v767_v52 = vadd.f32 %v765_v49, %v1478_v15  ;;  %v1109_v53 = vpop.f32.mrb[19].mxu0  ;;  %v905_v15 = vsel %vm903_vm2, %v1144_v62, 0 }
0x147f   :  { %1121 = vmatpush3.bf16.msra.mxu0 %v905_v15 }
0x1480   :  { %1203 = vtanh.f32 %v767_v52  ;;  %v997_v55 = vmul.f32 -1.442695, %v767_v52 }
0x1482   :  { %1205 = vpow2.f32 %v997_v55  ;;  %1123 = vmatmul.mubr.msk.bf16.vlgmr.msra.gmra.mrb[20].mxu0 %vm899_vm3, %v882_v63 }
0x148a   :  { %v1204_v54 = vpop.eup %1203 }
0x148b   :  { %780 = vrot.lane.b32.xlu0 %v1204_v54, %s1309_s21 }
0x148c   :  { %v1206_v56 = vpop.eup %1205 }
0x148d   :  { %v771_v57 = vadd.f32 1.0, %v1206_v56 }
0x148f   :  { %1207 = vrcp.f32 %v771_v57 }
0x1499   :  { %v1208_v58 = vpop.eup %1207 }
0x149a   :  { %v778_v3 = vmul.f32 %v1208_v58, %v776_v1 }
0x14fd   :  { %v781_v59 = vpop.permute.xlu0 %780 }
0x14fe   :  { %v783_v60 = vmul.f32 %v1208_v58, %v781_v59 }
0x1500   :  { %785 = vrot.lane.b32.xlu1 %v783_v60, %s1316_s3 }
0x1555   :  { %v941_v11 = vpop.f32.mrb[20].mxu0 }
0x1556   :  { %v1124_v12 = vpop.f32.mrb[21].mxu0  ;;  %v942_v0 = vadd.f32 %v941_v11, %v889_v20 }
0x1557   :  { %v944_v4 = vpop.f32.mrb[22].mxu0 }
0x1558   :  { %v1125_v16 = vpop.f32.mrb[23].mxu0  ;;  %v947_v24 = vmax.f32 %v942_v0, 0.0 }
0x155a   :  { %v952_v26 = vmul.f32 %v951_v22, %v947_v24 }
0x155c   :  { %v953_v27 = vsel %vm871_vm4, %v952_v26, 0.0 }
0x1572   :  { %v786_v5 = vpop.permute.xlu1 %785 }
0x1573   :  { %v788_v6 = vadd.f32 %v786_v5, %v778_v3 }
0x1575   :  { %1209 = vtanh.f32 %v788_v6 }
0x157f   :  { %v1210_v10 = vpop.eup %1209 }
0x1580   :  { %791 = vrot.lane.b32.xlu0 %v1210_v10, %s1309_s21  ;;  %s1317_s21 = smov 1  }
0x159f   :  { %954 = vadd.xlane.f32.xlu0 %v953_v27 }
0x15f2   :  { %v792_v19 = vpop.permute.xlu0 %791 }
0x15f3   :  { %v794_v21 = vmul.f32 %v1208_v58, %v792_v19 }
0x15f5   :  { %v797_v23 = vpack.c.bf16 %v794_v21, %v794_v21 }
0x15f7   :  { %v807_v25 = vrot.slane %v797_v23, 3 }
0x15f9   :  { %808 = vrot.lane.b32.xlu1 %v807_v25, %s1316_s3 }
0x162c   :  { %v955_v30 = vpop.xlane.xlu0 %954 }
0x162d   :  { %v956_v31 = vadd.f32 %v1001_v29, %v955_v30 }
0x162f   :  { %1211 = vtanh.f32 %v956_v31 }
0x1639   :  { %v1212_v32 = vpop.eup %1211 }
0x163a   :  { %959 = vrot.lane.b32.xlu0 %v1212_v32, %s1317_s21 }
0x166b   :  { %v809_v28 = vpop.permute.xlu1 %808 }
0x166c   :  { %1115 = vmatmul.mubr.msk.bf16.vlgmr.msra.gmra.mrb[16].mxu1 %vm122_vm1, %v809_v28 }
0x16ac   :  { %v960_v45 = vpop.permute.xlu0 %959 }
0x173f   :  { %v859_v36 = vpop.f32.mrb[16].mxu1 }
0x1740   :  { %v860_v37 = vadd.f32 %v859_v36, %v805_v34  ;;  %v1116_v9 = vpop.f32.mrb[17].mxu1 }
0x1741   :  { %v862_v39 = vpop.f32.mrb[18].mxu1 }
0x1742   :  { %v865_v40 = vmax.f32 %v860_v37, 0.0  ;;  %v1117_v41 = vpop.f32.mrb[19].mxu1 }
0x1744   :  { %v870_v42 = vmul.f32 %v869_v38, %v865_v40 }
0x1746   :  { %v872_v43 = vsel %vm871_vm4, %v870_v42, 0.0 }
0x1747   :  { %873 = vadd.xlane.f32.xlu1 %v872_v43 }
0x17d4   :  { %v874_v44 = vpop.xlane.xlu1 %873 }
0x17d5   :  { %v881_v46 = vadd.f32 %v1001_v29, %v874_v44 }
0x17d7   :  { %v962_v47 = vmul.f32 %v960_v45, %v881_v46 }
0x17d9   :  { %964 = vrot.lane.b32.xlu1 %v962_v47, %s1318_s8 }
0x184b   :  { %v965_v48 = vpop.permute.xlu1 %964 }
0x184c   :  { %968 = vst.msk [vmem:[%s1592_s9] sm:$0x3] %vm967_vm5, %v965_v48 }
0x184d   :  { %973 = vsyncpa [#allocation3], 1 }
0x184e   :  { %974 = vsyncpa [#allocation5], 1 }
0x184f   :  { %975 = vsyncpa [#allocation8], 1 }

</bundles_post_ra>
